<compile_context>
chip_gen: v5e
topology: v5e:2x2
jax: 0.10.0
libtpu: 0.0.40
codegen_flags: <defaults>
</compile_context>

<pallas_src>
import functools
import math

import jax
import jax.numpy as jnp
from jax.experimental import pallas as pl
from jax.experimental.pallas import tpu as pltpu

_LANES = 128          # TPU lane width
_SUBLANES = 8         # f32 sublane tile
_SMALL_B = 256        # <= this: single grid step with tb == B (full-extent block)
_TB_MAX = 2048        # batch-tile cap (VMEM is never the constraint at this size)
_VPU_FC1_MAX_K = 16   # fc1 contraction depth up to which the VPU-FMA path is used


def _round_up(x, m):
    return ((x + m - 1) // m) * m


def _dqn_kernel(x_ref, w1_ref, b1_ref, w2_ref, b2_ref, o_ref, *, vpu_fc1):
    x = x_ref[...]                                     # (tb, n_in) f32
    if vpu_fc1:
        # fc1 on the VPU: n_in is tiny, an MXU matmul would be almost pure
        # weight-load/drain latency.  Full-f32 broadcast FMAs; overlaps with
        # the fc2 MXU work.
        h = x[:, 0:1] * w1_ref[0:1, :] + b1_ref[...]
        for k in range(1, x.shape[1]):
            h = h + x[:, k:k + 1] * w1_ref[k:k + 1, :]
    else:
        # Fallback for larger n_in: bf16 MXU matmul with f32 accumulation.
        h = jnp.dot(x.astype(jnp.bfloat16), w1_ref[...].astype(jnp.bfloat16),
                    preferred_element_type=jnp.float32) + b1_ref[...]
    h = jnp.maximum(h, 0.0)                            # ReLU in f32 (v5e-safe VPU)
    # fc2 on the MXU: bf16 operands, f32 accumulation, lane-dense 128-wide store.
    y = jnp.dot(h.astype(jnp.bfloat16), w2_ref[...],
                preferred_element_type=jnp.float32)
    o_ref[...] = (y + b2_ref[...]).astype(o_ref.dtype)


def _choose_batch_tile(B):
    if B <= _SMALL_B:
        return B                              # single step; full-extent block is legal
    # Two (or more) balanced, sublane-aligned tiles -> both v7x TCs stay busy.
    tb = _round_up(pl.cdiv(B, 2), _SUBLANES)
    return min(tb, _TB_MAX)


@functools.partial(jax.jit, static_argnames=("n_out",))
def _dqn_forward(x, w1, b1_2d, w2p, b2p, *, n_out):
    B, n_in = x.shape
    n_hidden = w1.shape[1]
    n_out_pad = w2p.shape[1]

    tb = _choose_batch_tile(B)
    grid = (pl.cdiv(B, tb),)

    cost = pl.CostEstimate(
        flops=2 * B * n_hidden * (n_in + n_out_pad),
        transcendentals=0,
        bytes_accessed=(x.size * x.dtype.itemsize
                        + w1.size * w1.dtype.itemsize
                        + w2p.size * w2p.dtype.itemsize
                        + (b1_2d.size + b2p.size) * 4
                        + B * n_out_pad * 4),
    )

    out = pl.pallas_call(
        functools.partial(_dqn_kernel, vpu_fc1=(n_in <= _VPU_FC1_MAX_K)),
        out_shape=jax.ShapeDtypeStruct((B, n_out_pad), jnp.float32),
        grid=grid,
        in_specs=[
            pl.BlockSpec((tb, n_in), lambda i: (i, 0)),            # x: tiled over batch
            pl.BlockSpec((n_in, n_hidden), lambda i: (0, 0)),      # w1: VMEM-resident
            pl.BlockSpec((1, n_hidden), lambda i: (0, 0)),         # b1: VMEM-resident
            pl.BlockSpec((n_hidden, n_out_pad), lambda i: (0, 0)),  # w2 (lane-padded, bf16)
            pl.BlockSpec((1, n_out_pad), lambda i: (0, 0)),        # b2 (lane-padded)
        ],
        out_specs=pl.BlockSpec((tb, n_out_pad), lambda i: (i, 0)),
        compiler_params=pltpu.CompilerParams(
            dimension_semantics=("parallel",),   # batch tiles shard across v7x's 2 TCs
        ),
        cost_estimate=cost,
    )(x, w1, b1_2d, w2p, b2p)

    # TODO(synk): fold this slice into the consumer (e.g. argmax over actions) if a
    # lane-padded (B, 128) result is acceptable downstream; it is an extra XLA pass.
    return out[:, :n_out]


def prepare_dqn_params(w1, b1, w2, b2):
    """One-time parameter prep (hoisted out of the per-call hot path).

    Pads fc2 output features to 128 lanes (lane-dense MXU tile + unmasked store),
    reshapes biases to (1, n), and pre-casts the fc2 weight to bfloat16.
    """
    n_in, n_hidden = w1.shape
    n_out = w2.shape[1]
    n_out_pad = _round_up(max(n_out, _LANES), _LANES)
    w2p = jnp.zeros((n_hidden, n_out_pad), jnp.bfloat16)
    w2p = w2p.at[:, :n_out].set(w2.astype(jnp.bfloat16))
    b2p = jnp.zeros((1, n_out_pad), jnp.float32).at[:, :n_out].set(b2.astype(jnp.float32))
    return {
        "w1": w1.astype(jnp.float32),
        "b1": b1.reshape(1, n_hidden).astype(jnp.float32),
        "w2p": w2p,
        "b2p": b2p,
        "n_out": int(n_out),
    }


def dqn_forward(x, params):
    """DQN forward: relu(x @ w1 + b1) @ w2 + b2.  x: (B, n_in) f32 -> (B, n_out) f32."""
    return _dqn_forward(x, params["w1"], params["b1"], params["w2p"], params["b2p"],
                        n_out=params["n_out"])


def init_dqn_params(key, n_inputs, n_hidden, n_outputs):
    """Mimics PyTorch nn.Linear default init: U(-1/sqrt(fan_in), 1/sqrt(fan_in))."""
    k1, k2, k3, k4 = jax.random.split(key, 4)
    bound1 = 1.0 / math.sqrt(n_inputs)
    bound2 = 1.0 / math.sqrt(n_hidden)
    # stored as (in, out) = transpose of PyTorch's (out, in)
    w1 = jax.random.uniform(k1, (n_inputs, n_hidden), jnp.float32, -bound1, bound1)
    b1 = jax.random.uniform(k2, (n_hidden,), jnp.float32, -bound1, bound1)
    w2 = jax.random.uniform(k3, (n_hidden, n_outputs), jnp.float32, -bound2, bound2)
    b2 = jax.random.uniform(k4, (n_outputs,), jnp.float32, -bound2, bound2)
    return w1, b1, w2, b2


def _reference(x, w1, b1, w2, b2):
    """Pure-JAX reference emulating the kernel's numerics:
    fc1 in full f32 (VPU path for tiny n_in), fc2 with bf16 operands + f32 acc."""
    h = jnp.maximum(x @ w1 + b1, 0.0)
    y = jnp.dot(h.astype(jnp.bfloat16), w2.astype(jnp.bfloat16),
                preferred_element_type=jnp.float32) + b2
    return y


if __name__ == "__main__":
    # CartPole-like DQN: n_inputs=4 (state dim), n_outputs=2 (actions), n_hidden=128.
    n_inputs, n_hidden, n_outputs = 4, 128, 2

    key = jax.random.PRNGKey(0)
    kx, kp, kx2, kx3 = jax.random.split(key, 4)
    w1, b1, w2, b2 = init_dqn_params(kp, n_inputs, n_hidden, n_outputs)
    params = prepare_dqn_params(w1, b1, w2, b2)

    # Small inference-style batch (single grid step, full-extent batch block).
    batch = 8
    x = jax.random.normal(kx, (batch, n_inputs), dtype=jnp.float32)
    y = jax.block_until_ready(dqn_forward(x, params))
    assert y.shape == (batch, n_outputs)
    ref = _reference(x, w1, b1, w2, b2)
    assert jnp.allclose(y, ref, atol=2e-3, rtol=2e-3)
    # Loose check against the full-f32 math (bf16 fc2 operands, f32 accumulation).
    ref_f32 = jnp.maximum(x @ w1 + b1, 0.0) @ w2 + b2
    assert jnp.allclose(y, ref_f32, atol=5e-2, rtol=5e-2)

    # Single-state act() path (B=1, full-extent block).
    x1 = jax.random.normal(kx3, (1, n_inputs), dtype=jnp.float32)
    y1 = jax.block_until_ready(dqn_forward(x1, params))
    assert y1.shape == (1, n_outputs)
    assert jnp.allclose(y1, _reference(x1, w1, b1, w2, b2), atol=2e-3, rtol=2e-3)

    # Training-style replay-buffer batch: two balanced 304-row tiles (cdiv grid,
    # ragged last block masked by Pallas; rows are independent so that's safe).
    batch2 = 600
    x2 = jax.random.normal(kx2, (batch2, n_inputs), dtype=jnp.float32)
    y2 = jax.block_until_ready(dqn_forward(x2, params))
    assert y2.shape == (batch2, n_outputs)
    assert jnp.allclose(y2, _reference(x2, w1, b1, w2, b2), atol=2e-3, rtol=2e-3)

    print("KERNEL_OK")
</pallas_src>

<mosaic_0001>
module attributes {stable_mosaic.version = 11 : i64} {
  func.func @_dqn_kernel(%arg0: i32, %arg1: memref<8x4xf32, #tpu.memory_space<vmem>>, %arg2: memref<4x128xf32, #tpu.memory_space<vmem>>, %arg3: memref<1x128xf32, #tpu.memory_space<vmem>>, %arg4: memref<128x128xbf16, #tpu.memory_space<vmem>>, %arg5: memref<1x128xf32, #tpu.memory_space<vmem>>, %arg6: memref<8x128xf32, #tpu.memory_space<vmem>>) attributes {dimension_semantics = [#tpu.dimension_semantics<parallel>], iteration_bounds = array<i64: 1>, scalar_prefetch = 0 : i64, scratch_operands = 0 : i64, tpu.core_type = #tpu.core_type<tc>, window_params = [{transform_indices = @transform_0, window_bounds = array<i64: 8, 4>}, {pipeline_mode = #tpu.pipeline_mode<synchronous>, transform_indices = @transform_1, window_bounds = array<i64: 4, 128>}, {pipeline_mode = #tpu.pipeline_mode<synchronous>, transform_indices = @transform_2, window_bounds = array<i64: 1, 128>}, {pipeline_mode = #tpu.pipeline_mode<synchronous>, transform_indices = @transform_3, window_bounds = array<i64: 128, 128>}, {pipeline_mode = #tpu.pipeline_mode<synchronous>, transform_indices = @transform_4, window_bounds = array<i64: 1, 128>}, {transform_indices = @transform_5, window_bounds = array<i64: 8, 128>}]} {
    %c0 = arith.constant 0 : index
    %c0_0 = arith.constant 0 : index
    %0 = vector.load %arg1[%c0, %c0_0] : memref<8x4xf32, #tpu.memory_space<vmem>>, vector<8x4xf32>
    %1 = vector.extract_strided_slice %0 {offsets = [0, 0], sizes = [8, 1], strides = [1, 1]} : vector<8x4xf32> to vector<8x1xf32>
    %c0_1 = arith.constant 0 : index
    %c0_2 = arith.constant 0 : index
    %2 = vector.load %arg2[%c0_1, %c0_2] : memref<4x128xf32, #tpu.memory_space<vmem>>, vector<1x128xf32>
    %3 = vector.broadcast %1 : vector<8x1xf32> to vector<8x128xf32>
    %4 = vector.broadcast %2 : vector<1x128xf32> to vector<8x128xf32>
    %5 = arith.mulf %3, %4 : vector<8x128xf32>
    %c0_3 = arith.constant 0 : index
    %c0_4 = arith.constant 0 : index
    %6 = vector.load %arg3[%c0_3, %c0_4] : memref<1x128xf32, #tpu.memory_space<vmem>>, vector<1x128xf32>
    %7 = vector.broadcast %6 : vector<1x128xf32> to vector<8x128xf32>
    %8 = arith.addf %5, %7 : vector<8x128xf32>
    %9 = vector.extract_strided_slice %0 {offsets = [0, 1], sizes = [8, 1], strides = [1, 1]} : vector<8x4xf32> to vector<8x1xf32>
    %c1 = arith.constant 1 : index
    %c0_5 = arith.constant 0 : index
    %10 = vector.load %arg2[%c1, %c0_5] : memref<4x128xf32, #tpu.memory_space<vmem>>, vector<1x128xf32>
    %11 = vector.broadcast %9 : vector<8x1xf32> to vector<8x128xf32>
    %12 = vector.broadcast %10 : vector<1x128xf32> to vector<8x128xf32>
    %13 = arith.mulf %11, %12 : vector<8x128xf32>
    %14 = arith.addf %8, %13 : vector<8x128xf32>
    %15 = vector.extract_strided_slice %0 {offsets = [0, 2], sizes = [8, 1], strides = [1, 1]} : vector<8x4xf32> to vector<8x1xf32>
    %c2 = arith.constant 2 : index
    %c0_6 = arith.constant 0 : index
    %16 = vector.load %arg2[%c2, %c0_6] : memref<4x128xf32, #tpu.memory_space<vmem>>, vector<1x128xf32>
    %17 = vector.broadcast %15 : vector<8x1xf32> to vector<8x128xf32>
    %18 = vector.broadcast %16 : vector<1x128xf32> to vector<8x128xf32>
    %19 = arith.mulf %17, %18 : vector<8x128xf32>
    %20 = arith.addf %14, %19 : vector<8x128xf32>
    %21 = vector.extract_strided_slice %0 {offsets = [0, 3], sizes = [8, 1], strides = [1, 1]} : vector<8x4xf32> to vector<8x1xf32>
    %c3 = arith.constant 3 : index
    %c0_7 = arith.constant 0 : index
    %22 = vector.load %arg2[%c3, %c0_7] : memref<4x128xf32, #tpu.memory_space<vmem>>, vector<1x128xf32>
    %23 = vector.broadcast %21 : vector<8x1xf32> to vector<8x128xf32>
    %24 = vector.broadcast %22 : vector<1x128xf32> to vector<8x128xf32>
    %25 = arith.mulf %23, %24 : vector<8x128xf32>
    %26 = arith.addf %20, %25 : vector<8x128xf32>
    %cst = arith.constant 0.000000e+00 : f32
    %27 = vector.broadcast %cst : f32 to vector<8x128xf32>
    %28 = arith.maximumf %26, %27 : vector<8x128xf32>
    %29 = arith.truncf %28 : vector<8x128xf32> to vector<8x128xbf16>
    %c0_8 = arith.constant 0 : index
    %c0_9 = arith.constant 0 : index
    %30 = vector.load %arg4[%c0_8, %c0_9] : memref<128x128xbf16, #tpu.memory_space<vmem>>, vector<128x128xbf16>
    %cst_10 = arith.constant dense<0.000000e+00> : vector<8x128xf32>
    %31 = tpu.matmul %29, %30, %cst_10 {dimension_numbers = #tpu.dot_dimension_numbers<[1], [0], [0], [1], [0, 0, 1, 1], [], []>} : vector<8x128xbf16>, vector<128x128xbf16>, vector<8x128xf32> -> vector<8x128xf32>
    %c0_11 = arith.constant 0 : index
    %c0_12 = arith.constant 0 : index
    %32 = vector.load %arg5[%c0_11, %c0_12] : memref<1x128xf32, #tpu.memory_space<vmem>>, vector<1x128xf32>
    %33 = vector.broadcast %32 : vector<1x128xf32> to vector<8x128xf32>
    %34 = arith.addf %31, %33 : vector<8x128xf32>
    %c0_13 = arith.constant 0 : index
    %c0_14 = arith.constant 0 : index
    %35 = vector.load %arg6[%c0_13, %c0_14] : memref<8x128xf32, #tpu.memory_space<vmem>>, vector<8x128xf32>
    tpu.vector_store %arg6[%c0_13, %c0_14], %34 {strides = array<i32>} : memref<8x128xf32, #tpu.memory_space<vmem>>, vector<8x128xf32>,
    return
  }
  func.func @transform_0(%arg0: i32) -> (i32, i32) {
    %c0_i32 = arith.constant 0 : i32
    %c0_i32_0 = arith.constant 0 : i32
    return %arg0, %c0_i32 : i32, i32
  }
  func.func @transform_1(%arg0: i32) -> (i32, i32) {
    %c0_i32 = arith.constant 0 : i32
    %c0_i32_0 = arith.constant 0 : i32
    %c0_i32_1 = arith.constant 0 : i32
    return %c0_i32, %c0_i32_0 : i32, i32
  }
  func.func @transform_2(%arg0: i32) -> (i32, i32) {
    %c0_i32 = arith.constant 0 : i32
    %c0_i32_0 = arith.constant 0 : i32
    %c0_i32_1 = arith.constant 0 : i32
    return %c0_i32, %c0_i32_0 : i32, i32
  }
  func.func @transform_3(%arg0: i32) -> (i32, i32) {
    %c0_i32 = arith.constant 0 : i32
    %c0_i32_0 = arith.constant 0 : i32
    %c0_i32_1 = arith.constant 0 : i32
    return %c0_i32, %c0_i32_0 : i32, i32
  }
  func.func @transform_4(%arg0: i32) -> (i32, i32) {
    %c0_i32 = arith.constant 0 : i32
    %c0_i32_0 = arith.constant 0 : i32
    %c0_i32_1 = arith.constant 0 : i32
    return %c0_i32, %c0_i32_0 : i32, i32
  }
  func.func @transform_5(%arg0: i32) -> (i32, i32) {
    %c0_i32 = arith.constant 0 : i32
    %c0_i32_0 = arith.constant 0 : i32
    return %arg0, %c0_i32 : i32, i32
  }
}

</mosaic_0001>

<bundles_post_ra>
// kernel: _dqn_forward.1
= control target key start
LH: loop header
LB: loop body
LE: loop exit
PB: predicated region body
PF: predicated region fallthrough
CT: control target
= control target key end

     0   :  { %10 = vsyncpa [#allocation3], 0  ;;  %s247_s21 = smov [#allocation2]   ;;  %s248_s23 = smov 64   ;;  %s311_s0 = inlined_call_operand.vmem [shape: f32[8,4], index: 0, kind: input, shape index: {}]   ;;  %s312_s1 = inlined_call_operand.vmem [shape: f32[4,128], index: 1, kind: input, shape index: {}]   ;;  %s313_s2 = inlined_call_operand.vmem [shape: f32[1,128], index: 2, kind: input, shape index: {}]   ;;  %s314_s3 = inlined_call_operand.hbm [shape: bf16[128,128], index: 3, kind: input, shape index: {}]   ;;  %s315_s4 = inlined_call_operand.vmem [shape: f32[1,128], index: 4, kind: input, shape index: {}]   ;;  %s316_s5 = inlined_call_operand.vmem [shape: f32[8,128], index: 5, kind: output, shape index: {}]  }
   0x1   :  { %s21_s20 = sshll.u32 %s314_s3, 4  ;;  %s23_s22 = sshll.u32 %s247_s21, 4  ;;  %s22_s20 = int_to_ptr.hbm [resolvable:$true] %s21_s20  ;;  %s24_s22 = int_to_ptr.vmem [resolvable:$true] %s23_s22 }
   0x2   :  { %s249_s24 = smov 4  }
   0x3   :  { %29 = dma.hbm_to_vmem [thread:$0]  %s22_s20, 1024, %s24_s22, [#allocation3], %s248_s23, %s248_s23, %s249_s24  }
   0x4   :  { %245 = dma.done.wait [#allocation3], 1024  }
   0x5   :  { %246 = vsyncadd [#allocation3], 4294966272  ;;  %v250_v0 = vmov 0   ;;  %v251_v1 = vmov 2   ;;  %v36_v2 = vld [vmem:[%s311_s0] sm:$0xff]  ;;  %v202_v3 = vld [vmem:[#allocation2 + $0x38] sm:$0xff] }
   0x6   :  { %210 = vset.pattern.permute.xlu0 %v250_v0  ;;  %212 = vset.pattern.permute.xlu1 %v251_v1  ;;  %v201_v4 = vld [vmem:[#allocation2 + $0x30] sm:$0xff]  ;;  %v200_v5 = vld [vmem:[#allocation2 + $0x28] sm:$0xff]  ;;  %v252_v6 = vmov 1   ;;  %v253_v7 = vmov 3   ;;  %v199_v8 = vld [vmem:[#allocation2 + $0x20] sm:$0xff] }
   0x7   :  { %40 = vperm.xlu0 %210, %v36_v2   ;;  %60 = vperm.xlu1 %212, %v36_v2   ;;  %v198_v9 = vld [vmem:[#allocation2 + $0x18] sm:$0xff]  ;;  %v197_v10 = vld [vmem:[#allocation2 + $0x10] sm:$0xff]  ;;  %v196_v11 = vld [vmem:[#allocation2 + $0x8] sm:$0xff] }
   0x8   :  { %144 = vmatpush.bf16.msra.mxu0 %v202_v3  ;;  %v195_v12 = vld [vmem:[#allocation2] sm:$0xff] }
   0x9   :  { %v215_v15 = vld [vmem:[%s312_s1] ss:$0 sm:$0xff]  ;;  %v218_v18 = vld [vmem:[%s312_s1 + $0x1] ss:$0 sm:$0xff]  ;;  %v217_v19 = vld [vmem:[%s312_s1 + $0x2] ss:$0 sm:$0xff] }
   0xa   :  { %v216_v16 = vld [vmem:[%s313_s2] ss:$0 sm:$0xff]  ;;  %v219_v20 = vld [vmem:[%s312_s1 + $0x3] ss:$0 sm:$0xff] }
   0xb   :  { %v220_v32 = vld [vmem:[%s315_s4] ss:$0 sm:$0xff] }
   0xc   :  { %145 = vmatpush.bf16.msra.mxu0 %v201_v4 }
   0xf   :  { %211 = vset.pattern.permute.xlu0 %v252_v6  ;;  %213 = vset.pattern.permute.xlu1 %v253_v7 }
  0x10   :  { %52 = vperm.xlu0 %211, %v36_v2   ;;  %68 = vperm.xlu1 %213, %v36_v2  }
  0x11   :  { %146 = vmatpush.bf16.msra.mxu0 %v200_v5 }
  0x15   :  { %147 = vmatpush.bf16.msra.mxu0 %v199_v8 }
  0x18   :  { %214 = vset.pattern.permute.xlu0 %v253_v7 }
  0x19   :  { %148 = vmatpush.bf16.msra.mxu0 %v198_v9 }
  0x1d   :  { %149 = vmatpush.bf16.msra.mxu0 %v197_v10 }
  0x21   :  { %150 = vmatpush.bf16.msra.mxu0 %v196_v11 }
  0x25   :  { %151 = vmatpush.bf16.msra.mxu0 %v195_v12 }
  0x79   :  { %v41_v13 = vpop.permute.xlu0 %40  ;;  %v61_v14 = vpop.permute.xlu1 %60 }
  0x7a   :  { %v44_v17 = vmul.f32 %v215_v15, %v41_v13  ;;  %v64_v25 = vmul.f32 %v217_v19, %v61_v14 }
  0x7c   :  { %v49_v23 = vadd.f32 %v216_v16, %v44_v17 }
  0x82   :  { %v53_v21 = vpop.permute.xlu0 %52  ;;  %v69_v22 = vpop.permute.xlu1 %68 }
  0x83   :  { %v56_v24 = vmul.f32 %v218_v18, %v53_v21  ;;  %v72_v27 = vmul.f32 %v219_v20, %v69_v22 }
  0x85   :  { %v57_v26 = vadd.f32 %v56_v24, %v49_v23 }
  0x87   :  { %v65_v28 = vadd.f32 %v64_v25, %v57_v26 }
  0x89   :  { %v73_v29 = vadd.f32 %v72_v27, %v65_v28 }
  0x8b   :  { %v74_v30 = vmax.f32 %v73_v29, 0.0 }
  0x8d   :  { %v75_v31 = vpack.c.bf16 %v74_v30, %v74_v30 }
  0x8f   :  { %152 = vmatmul.bf16.vlgmr.msra.gmra.mxu0 %v75_v31 }
 0x10c   :  { %v153_v33 = vpop.f32.mrf.mxu0 }
 0x10d   :  { %v154_v34 = vadd.f32 %v220_v32, %v153_v33 }
 0x10f   :  { %157 = vst [vmem:[%s316_s5] sm:$0xff] %v154_v34 }
 0x114   :  { %v155_v35 = vpop.f32.mrf.mxu0 }
 0x115   :  { %162 = vsyncpa [#allocation3], 1 }

</bundles_post_ra>
